<compile_context>
chip_gen: v6e
topology: v6e:2x2x1
jax: 0.10.0
libtpu: 0.0.40
codegen_flags: <defaults>
</compile_context>

<pallas_src>
import numpy as np
import jax
import jax.numpy as jnp
from jax.experimental import pallas as pl
from jax.experimental.pallas import tpu as pltpu


def _made_masks(nin, hidden_sizes, nout, natural_ordering=True, seed=0):
    """Replicates MADE.update_masks() for num_masks=1 (deterministic).

    Returns masks with shape (fan_in, fan_out) per layer (pre-transpose)."""
    rng = np.random.RandomState(seed)
    L = len(hidden_sizes)
    m = {}
    m[-1] = np.arange(nin) if natural_ordering else rng.permutation(nin)
    for l in range(L):
        m[l] = rng.randint(m[l - 1].min(), nin - 1, size=hidden_sizes[l])
    masks = [m[l - 1][:, None] <= m[l][None, :] for l in range(L)]
    masks.append(m[L - 1][:, None] < m[-1][None, :])
    if nout > nin:
        k = nout // nin
        masks[-1] = np.concatenate([masks[-1]] * k, axis=1)
    return [np.asarray(mk, dtype=np.float32) for mk in masks]


def _armlp_kernel(x_ref, w0_ref, b0_ref, w1_ref, b1_ref, w2_ref, b2_ref,
                  w3_ref, b3_ref, o_ref):
    """Transposed orientation: x_ref (nin, TB); wL (foutL, finL); bL (foutL, 1).

    Matmul inputs are in the weights' (compute) dtype; accumulation, bias add and
    ReLU are float32 so the VPU path is f32-only (safe on v5e, cheap on v6e/v7x)."""
    cdt = w0_ref.dtype
    h = jnp.dot(w0_ref[...], x_ref[...],
                preferred_element_type=jnp.float32) + b0_ref[...]
    h = jnp.maximum(h, 0.0)
    h = jnp.dot(w1_ref[...], h.astype(cdt),
                preferred_element_type=jnp.float32) + b1_ref[...]
    h = jnp.maximum(h, 0.0)
    h = jnp.dot(w2_ref[...], h.astype(cdt),
                preferred_element_type=jnp.float32) + b2_ref[...]
    h = jnp.maximum(h, 0.0)
    o = jnp.dot(w3_ref[...], h.astype(cdt),
                preferred_element_type=jnp.float32) + b3_ref[...]
    o_ref[...] = o.astype(o_ref.dtype)


def _choose_batch_tile(B, nin, nh, nout, in_bytes, out_bytes,
                       vmem_budget_bytes=24 * 1024 * 1024, max_tile=8192):
    """Batch-tile (lane axis) sized from VMEM arithmetic, not a fixed magic number."""
    # Conservative per-batch-column VMEM bytes:
    #   x block double-buffered + out block double-buffered + a few live (nh,.) f32
    #   intermediates.  Weights/biases are tiny and constant.
    per_col = (2 * nin * in_bytes
               + 2 * nout * out_bytes
               + 4 * nh * 4)
    cap = max(128, (vmem_budget_bytes // per_col) // 128 * 128)
    tb = min(max_tile, cap)
    if B <= tb:
        # Single block == full array: exempt from the 128-lane divisibility rule.
        return B
    # Keep grid >= 2 so the "parallel" batch axis can shard across v7x's 2 TCs.
    half = max(128, (B // 2) // 128 * 128)
    return min(tb, half)


def armlp_forward(x, params, *, compute_dtype=jnp.bfloat16,
                  max_batch_tile=8192, vmem_budget_bytes=24 * 1024 * 1024):
    """Pallas ARMLP forward.

    x      : (B, nin) float32
    params : list of 4 tuples (Wm, b) with Wm = (mask * W) in the native PyTorch
             (fan_out, fan_in) layout (mask already folded in) and b of shape
             (fan_out,) or (fan_out, 1), float32.
    returns (B, nout) in x.dtype (float32).
    """
    B, nin = x.shape
    nh = params[0][0].shape[0]
    nout = params[-1][0].shape[0]
    out_dtype = x.dtype

    in_bytes = jnp.dtype(compute_dtype).itemsize
    out_bytes = jnp.dtype(out_dtype).itemsize
    tb = _choose_batch_tile(B, nin, nh, nout, in_bytes, out_bytes,
                            vmem_budget_bytes=vmem_budget_bytes,
                            max_tile=max_batch_tile)
    grid = (pl.cdiv(B, tb),)

    # One-time layout plumbing in the wrapper: batch onto the lane axis, bf16 I/O.
    xt = x.T.astype(compute_dtype)                      # (nin, B)

    in_specs = [pl.BlockSpec((nin, tb), lambda i: (0, i))]
    flat_args = [xt]
    for (w, b) in params:
        fout, fin = w.shape
        # Constant block index -> weights/biases DMA'd once, VMEM-resident.
        in_specs.append(pl.BlockSpec((fout, fin), lambda i: (0, 0)))
        in_specs.append(pl.BlockSpec((fout, 1), lambda i: (0, 0)))
        flat_args.append(w.astype(compute_dtype))
        flat_args.append(jnp.reshape(b, (fout, 1)).astype(jnp.float32))

    out_specs = pl.BlockSpec((nout, tb), lambda i: (0, i))

    out_t = pl.pallas_call(
        _armlp_kernel,
        out_shape=jax.ShapeDtypeStruct((nout, B), out_dtype),
        grid_spec=pltpu.PrefetchScalarGridSpec(
            num_scalar_prefetch=0,
            grid=grid,
            in_specs=in_specs,
            out_specs=out_specs,
        ),
        compiler_params=pltpu.CompilerParams(
            dimension_semantics=("parallel",),
        ),
    )(*flat_args)
    return out_t.T                                      # (B, nout)


if __name__ == "__main__":
    key = jax.random.PRNGKey(0)

    # Small shapes consistent with ARMLP usage in normalizing flows.
    batch = 16
    nin = 8
    nh = 32
    nout = 2 * nin  # e.g. scale + shift per input dim

    masks = _made_masks(nin, [nh, nh, nh], nout, natural_ordering=True, seed=0)

    layer_sizes = [(nin, nh), (nh, nh), (nh, nh), (nh, nout)]
    keys = jax.random.split(key, 1 + 2 * len(layer_sizes))
    x = jax.random.normal(keys[0], (batch, nin), dtype=jnp.float32)

    params = []
    for li, (fin, fout) in enumerate(layer_sizes):
        kw, kb = keys[1 + 2 * li], keys[2 + 2 * li]
        # Native PyTorch Linear layout: W is (fan_out, fan_in).
        w = jax.random.normal(kw, (fout, fin), dtype=jnp.float32) / np.sqrt(fin)
        b = jax.random.normal(kb, (fout,), dtype=jnp.float32) * 0.1
        # MaskedLinear: mask is stored transposed, fold it into the weight once.
        wm = w * jnp.asarray(masks[li]).T
        params.append((wm, b))

    out = armlp_forward(x, params)   # default compute_dtype=bf16 (matmul I/O only)
    out = jax.block_until_ready(out)

    # Pure-JAX reference mirroring the same dtype path:
    # bf16 matmul inputs, f32 accumulation, f32 bias/ReLU, f32 output.
    cdt = jnp.bfloat16
    h = x.astype(cdt).T
    for li, (wm, b) in enumerate(params):
        h = jnp.dot(wm.astype(cdt), h,
                    preferred_element_type=jnp.float32) + b[:, None]
        if li < len(params) - 1:
            h = jnp.maximum(h, 0.0).astype(cdt)
    ref = h.T

    assert out.shape == (batch, nout), out.shape
    assert out.dtype == jnp.float32, out.dtype
    assert bool(jnp.allclose(out, ref, atol=1e-3, rtol=1e-3)), float(
        jnp.max(jnp.abs(out - ref)))

    print("KERNEL_OK")
</pallas_src>

<mosaic_0001>
module attributes {stable_mosaic.version = 11 : i64} {
  func.func @_armlp_kernel(%arg0: i32, %arg1: memref<8x16xbf16, #tpu.memory_space<vmem>>, %arg2: memref<32x8xbf16, #tpu.memory_space<vmem>>, %arg3: memref<32x1xf32, #tpu.memory_space<vmem>>, %arg4: memref<32x32xbf16, #tpu.memory_space<vmem>>, %arg5: memref<32x1xf32, #tpu.memory_space<vmem>>, %arg6: memref<32x32xbf16, #tpu.memory_space<vmem>>, %arg7: memref<32x1xf32, #tpu.memory_space<vmem>>, %arg8: memref<16x32xbf16, #tpu.memory_space<vmem>>, %arg9: memref<16x1xf32, #tpu.memory_space<vmem>>, %arg10: memref<16x16xf32, #tpu.memory_space<vmem>>) attributes {dimension_semantics = [#tpu.dimension_semantics<parallel>], iteration_bounds = array<i64: 1>, scalar_prefetch = 0 : i64, scratch_operands = 0 : i64, tpu.core_type = #tpu.core_type<tc>, window_params = [{transform_indices = @transform_0, window_bounds = array<i64: 8, 16>}, {pipeline_mode = #tpu.pipeline_mode<synchronous>, transform_indices = @transform_1, window_bounds = array<i64: 32, 8>}, {pipeline_mode = #tpu.pipeline_mode<synchronous>, transform_indices = @transform_2, window_bounds = array<i64: 32, 1>}, {pipeline_mode = #tpu.pipeline_mode<synchronous>, transform_indices = @transform_3, window_bounds = array<i64: 32, 32>}, {pipeline_mode = #tpu.pipeline_mode<synchronous>, transform_indices = @transform_4, window_bounds = array<i64: 32, 1>}, {pipeline_mode = #tpu.pipeline_mode<synchronous>, transform_indices = @transform_5, window_bounds = array<i64: 32, 32>}, {pipeline_mode = #tpu.pipeline_mode<synchronous>, transform_indices = @transform_6, window_bounds = array<i64: 32, 1>}, {pipeline_mode = #tpu.pipeline_mode<synchronous>, transform_indices = @transform_7, window_bounds = array<i64: 16, 32>}, {pipeline_mode = #tpu.pipeline_mode<synchronous>, transform_indices = @transform_8, window_bounds = array<i64: 16, 1>}, {transform_indices = @transform_9, window_bounds = array<i64: 16, 16>}]} {
    %c0 = arith.constant 0 : index
    %c0_0 = arith.constant 0 : index
    %0 = vector.load %arg2[%c0, %c0_0] : memref<32x8xbf16, #tpu.memory_space<vmem>>, vector<32x8xbf16>
    %c0_1 = arith.constant 0 : index
    %c0_2 = arith.constant 0 : index
    %1 = vector.load %arg1[%c0_1, %c0_2] : memref<8x16xbf16, #tpu.memory_space<vmem>>, vector<8x16xbf16>
    %cst = arith.constant dense<0.000000e+00> : vector<32x16xf32>
    %2 = tpu.matmul %0, %1, %cst {dimension_numbers = #tpu.dot_dimension_numbers<[1], [0], [0], [1], [0, 0, 1, 1], [], []>} : vector<32x8xbf16>, vector<8x16xbf16>, vector<32x16xf32> -> vector<32x16xf32>
    %c0_3 = arith.constant 0 : index
    %c0_4 = arith.constant 0 : index
    %3 = vector.load %arg3[%c0_3, %c0_4] : memref<32x1xf32, #tpu.memory_space<vmem>>, vector<32x1xf32>
    %4 = vector.broadcast %3 : vector<32x1xf32> to vector<32x16xf32>
    %5 = arith.addf %2, %4 : vector<32x16xf32>
    %cst_5 = arith.constant 0.000000e+00 : f32
    %6 = vector.broadcast %cst_5 : f32 to vector<32x16xf32>
    %7 = arith.maximumf %5, %6 : vector<32x16xf32>
    %c0_6 = arith.constant 0 : index
    %c0_7 = arith.constant 0 : index
    %8 = vector.load %arg4[%c0_6, %c0_7] : memref<32x32xbf16, #tpu.memory_space<vmem>>, vector<32x32xbf16>
    %9 = arith.truncf %7 : vector<32x16xf32> to vector<32x16xbf16>
    %cst_8 = arith.constant dense<0.000000e+00> : vector<32x16xf32>
    %10 = tpu.matmul %8, %9, %cst_8 {dimension_numbers = #tpu.dot_dimension_numbers<[1], [0], [0], [1], [0, 0, 1, 1], [], []>} : vector<32x32xbf16>, vector<32x16xbf16>, vector<32x16xf32> -> vector<32x16xf32>
    %c0_9 = arith.constant 0 : index
    %c0_10 = arith.constant 0 : index
    %11 = vector.load %arg5[%c0_9, %c0_10] : memref<32x1xf32, #tpu.memory_space<vmem>>, vector<32x1xf32>
    %12 = vector.broadcast %11 : vector<32x1xf32> to vector<32x16xf32>
    %13 = arith.addf %10, %12 : vector<32x16xf32>
    %cst_11 = arith.constant 0.000000e+00 : f32
    %14 = vector.broadcast %cst_11 : f32 to vector<32x16xf32>
    %15 = arith.maximumf %13, %14 : vector<32x16xf32>
    %c0_12 = arith.constant 0 : index
    %c0_13 = arith.constant 0 : index
    %16 = vector.load %arg6[%c0_12, %c0_13] : memref<32x32xbf16, #tpu.memory_space<vmem>>, vector<32x32xbf16>
    %17 = arith.truncf %15 : vector<32x16xf32> to vector<32x16xbf16>
    %cst_14 = arith.constant dense<0.000000e+00> : vector<32x16xf32>
    %18 = tpu.matmul %16, %17, %cst_14 {dimension_numbers = #tpu.dot_dimension_numbers<[1], [0], [0], [1], [0, 0, 1, 1], [], []>} : vector<32x32xbf16>, vector<32x16xbf16>, vector<32x16xf32> -> vector<32x16xf32>
    %c0_15 = arith.constant 0 : index
    %c0_16 = arith.constant 0 : index
    %19 = vector.load %arg7[%c0_15, %c0_16] : memref<32x1xf32, #tpu.memory_space<vmem>>, vector<32x1xf32>
    %20 = vector.broadcast %19 : vector<32x1xf32> to vector<32x16xf32>
    %21 = arith.addf %18, %20 : vector<32x16xf32>
    %cst_17 = arith.constant 0.000000e+00 : f32
    %22 = vector.broadcast %cst_17 : f32 to vector<32x16xf32>
    %23 = arith.maximumf %21, %22 : vector<32x16xf32>
    %c0_18 = arith.constant 0 : index
    %c0_19 = arith.constant 0 : index
    %24 = vector.load %arg8[%c0_18, %c0_19] : memref<16x32xbf16, #tpu.memory_space<vmem>>, vector<16x32xbf16>
    %25 = arith.truncf %23 : vector<32x16xf32> to vector<32x16xbf16>
    %cst_20 = arith.constant dense<0.000000e+00> : vector<16x16xf32>
    %26 = tpu.matmul %24, %25, %cst_20 {dimension_numbers = #tpu.dot_dimension_numbers<[1], [0], [0], [1], [0, 0, 1, 1], [], []>} : vector<16x32xbf16>, vector<32x16xbf16>, vector<16x16xf32> -> vector<16x16xf32>
    %c0_21 = arith.constant 0 : index
    %c0_22 = arith.constant 0 : index
    %27 = vector.load %arg9[%c0_21, %c0_22] : memref<16x1xf32, #tpu.memory_space<vmem>>, vector<16x1xf32>
    %28 = vector.broadcast %27 : vector<16x1xf32> to vector<16x16xf32>
    %29 = arith.addf %26, %28 : vector<16x16xf32>
    %c0_23 = arith.constant 0 : index
    %c0_24 = arith.constant 0 : index
    %30 = vector.load %arg10[%c0_23, %c0_24] : memref<16x16xf32, #tpu.memory_space<vmem>>, vector<16x16xf32>
    tpu.vector_store %arg10[%c0_23, %c0_24], %29 {strides = array<i32>} : memref<16x16xf32, #tpu.memory_space<vmem>>, vector<16x16xf32>,
    return
  }
  func.func @transform_0(%arg0: i32) -> (i32, i32) {
    %c0_i32 = arith.constant 0 : i32
    %c0_i32_0 = arith.constant 0 : i32
    return %c0_i32, %arg0 : i32, i32
  }
  func.func @transform_1(%arg0: i32) -> (i32, i32) {
    %c0_i32 = arith.constant 0 : i32
    %c0_i32_0 = arith.constant 0 : i32
    %c0_i32_1 = arith.constant 0 : i32
    return %c0_i32, %c0_i32_0 : i32, i32
  }
  func.func @transform_2(%arg0: i32) -> (i32, i32) {
    %c0_i32 = arith.constant 0 : i32
    %c0_i32_0 = arith.constant 0 : i32
    %c0_i32_1 = arith.constant 0 : i32
    return %c0_i32, %c0_i32_0 : i32, i32
  }
  func.func @transform_3(%arg0: i32) -> (i32, i32) {
    %c0_i32 = arith.constant 0 : i32
    %c0_i32_0 = arith.constant 0 : i32
    %c0_i32_1 = arith.constant 0 : i32
    return %c0_i32, %c0_i32_0 : i32, i32
  }
  func.func @transform_4(%arg0: i32) -> (i32, i32) {
    %c0_i32 = arith.constant 0 : i32
    %c0_i32_0 = arith.constant 0 : i32
    %c0_i32_1 = arith.constant 0 : i32
    return %c0_i32, %c0_i32_0 : i32, i32
  }
  func.func @transform_5(%arg0: i32) -> (i32, i32) {
    %c0_i32 = arith.constant 0 : i32
    %c0_i32_0 = arith.constant 0 : i32
    %c0_i32_1 = arith.constant 0 : i32
    return %c0_i32, %c0_i32_0 : i32, i32
  }
  func.func @transform_6(%arg0: i32) -> (i32, i32) {
    %c0_i32 = arith.constant 0 : i32
    %c0_i32_0 = arith.constant 0 : i32
    %c0_i32_1 = arith.constant 0 : i32
    return %c0_i32, %c0_i32_0 : i32, i32
  }
  func.func @transform_7(%arg0: i32) -> (i32, i32) {
    %c0_i32 = arith.constant 0 : i32
    %c0_i32_0 = arith.constant 0 : i32
    %c0_i32_1 = arith.constant 0 : i32
    return %c0_i32, %c0_i32_0 : i32, i32
  }
  func.func @transform_8(%arg0: i32) -> (i32, i32) {
    %c0_i32 = arith.constant 0 : i32
    %c0_i32_0 = arith.constant 0 : i32
    %c0_i32_1 = arith.constant 0 : i32
    return %c0_i32, %c0_i32_0 : i32, i32
  }
  func.func @transform_9(%arg0: i32) -> (i32, i32) {
    %c0_i32 = arith.constant 0 : i32
    %c0_i32_0 = arith.constant 0 : i32
    return %c0_i32, %arg0 : i32, i32
  }
}

</mosaic_0001>

<bundles_post_ra>
// kernel: tpu_custom_call.1
= control target key start
LH: loop header
LB: loop body
LE: loop exit
PB: predicated region body
PF: predicated region fallthrough
CT: control target
= control target key end

     0   :  { %vm80_vm0 = vcmask 1043456   ;;  %vm73_vm1 = vcmask 64512   ;;  %v516_v5 = vmov 0   ;;  %s646_s0 = inlined_call_operand.vmem [shape: bf16[8,16], index: 0, kind: input, shape index: {}]   ;;  %s647_s1 = inlined_call_operand.vmem [shape: bf16[32,8], index: 1, kind: input, shape index: {}]   ;;  %s648_s2 = inlined_call_operand.vmem [shape: f32[32,1], index: 2, kind: input, shape index: {}]   ;;  %s649_s3 = inlined_call_operand.vmem [shape: bf16[32,32], index: 3, kind: input, shape index: {}]   ;;  %s650_s4 = inlined_call_operand.vmem [shape: f32[32,1], index: 4, kind: input, shape index: {}]   ;;  %s651_s5 = inlined_call_operand.vmem [shape: bf16[32,32], index: 5, kind: input, shape index: {}]   ;;  %s652_s6 = inlined_call_operand.vmem [shape: f32[32,1], index: 6, kind: input, shape index: {}]   ;;  %s653_s7 = inlined_call_operand.vmem [shape: bf16[16,32], index: 7, kind: input, shape index: {}]   ;;  %s654_s8 = inlined_call_operand.vmem [shape: f32[16,1], index: 8, kind: input, shape index: {}]   ;;  %s655_s9 = inlined_call_operand.hbm [shape: f32[16,16], index: 9, kind: output, shape index: {}]  }
   0x1   :  { %v38_v0 = vld [vmem:[%s646_s0] sm:$0xf]  ;;  %v488_v3 = vld [vmem:[%s647_s1 + $0x8] sm:$0xff]   ;;  %v41_v4 = vld [vmem:[%s648_s2 + $0x10] sm:$0xff]  ;;  %485 = vset.pattern.permute.xlu0 %v516_v5  ;;  %486 = vset.pattern.permute.xlu1 %v516_v5 }
   0x2   :  { %v487_v1 = vld [vmem:[%s647_s1] sm:$0xff]   ;;  %478 = vmatprep.subr.msk.bf16.mxu0 %vm80_vm0, %v38_v0  ;;  %v82_v2 = vsel %vm80_vm0, %v38_v0, 0  ;;  %55 = vperm.xlu0 %485, %v41_v4   ;;  %v42_v7 = vld [vmem:[%s648_s2 + $0x18] sm:$0xff]  ;;  %v40_v8 = vld [vmem:[%s648_s2 + $0x8] sm:$0xff] }
   0x3   :  { %449 = vmatpush3.bf16.msra.mxu0 %v82_v2  ;;  %450 = vmatprep.mubr.msk.bf16.mxu0 %vm73_vm1, %v487_v1  ;;  %v39_v6 = vld [vmem:[%s648_s2] sm:$0xff]  ;;  %v145_v9 = vld [vmem:[%s650_s4 + $0x10] sm:$0xff]  ;;  %v146_v10 = vld [vmem:[%s650_s4 + $0x18] sm:$0xff] }
   0x4   :  { %45 = vperm.xlu1 %486, %v39_v6  }
   0x6   :  { %451 = vmatmul.mubr.msk.bf16.vlgmr.msra.gmra.mxu0 %vm73_vm1, %v488_v3  ;;  %60 = vperm.xlu0 %485, %v42_v7  }
   0x8   :  { %50 = vperm.xlu1 %486, %v40_v8  }
   0x9   :  { %14 = vsyncpa [#allocation3], 0  ;;  %v143_v11 = vld [vmem:[%s650_s4] sm:$0xff]  ;;  %v144_v12 = vld [vmem:[%s650_s4 + $0x8] sm:$0xff]  ;;  %vm177_vm2 = vcmask 261120   ;;  %v517_v59 = vmov 0.0  }
   0xa   :  { %159 = vperm.xlu0 %485, %v145_v9   ;;  %v245_v13 = vld [vmem:[%s652_s6 + $0x10] sm:$0xff]  ;;  %v246_v14 = vld [vmem:[%s652_s6 + $0x18] sm:$0xff]  ;;  %v243_v15 = vld [vmem:[%s652_s6] sm:$0xff]  ;;  %vm518_vm3 = vmmov 0   ;;  %vm401_vm4 = vcmask 130048   ;;  %s519_s22 = smov [#allocation2]  }
   0xb   :  { %v244_v16 = vld [vmem:[%s652_s6 + $0x8] sm:$0xff]  ;;  %v340_v17 = vld [vmem:[%s654_s8] sm:$0xff]  ;;  %s409_s23 = sshll.u32 %s519_s22, 4  ;;  %s410_s23 = int_to_ptr.vmem [resolvable:$true] %s409_s23 }
   0xc   :  { %164 = vperm.xlu1 %486, %v146_v10   ;;  %v341_v18 = vld [vmem:[%s654_s8 + $0x8] sm:$0xff]  ;;  %v489_v19 = vld [vmem:[%s649_s3] sm:$0xff]   ;;  %s494_s24 = scalar_lea.vmem %s410_s23, 256  ;;  %p499_p1 = scmp.lt.s32.totalorder %s410_s23, %s410_s23 }
   0xd   :  { %458 = vmatprep.mubr.msk.bf16.mxu1 %vm177_vm2, %v489_v19  ;;  %v490_v38 = vld [vmem:[%s649_s3 + $0x8] sm:$0xff]   ;;  %v491_v39 = vld [vmem:[%s651_s5] sm:$0xff]   ;;  %p495_p0 = scmp.ne.s32.totalorder %s410_s23, %s494_s24  ;;  %p500_p2 = scmp.lt.s32.totalorder %s494_s24, %s494_s24 }
   0xe   :  { %149 = vperm.xlu0 %485, %v143_v11   ;;  %466 = vmatprep.mubr.msk.bf16.mxu0 %vm177_vm2, %v491_v39  ;;  %v492_v58 = vld [vmem:[%s651_s5 + $0x8] sm:$0xff]  }
   0xf   :  { %p501_p3 = por %p500_p2, %p499_p1 }
  0x10   :  { %154 = vperm.xlu1 %486, %v144_v12  }
  0x11   :  { %p502_p4 = pnand %p501_p3, %p495_p0 }
  0x12   :  { %259 = vperm.xlu0 %485, %v245_v13  }
  0x14   :  { %264 = vperm.xlu1 %486, %v246_v14   ;;  %v493_v14 = vld [vmem:[%s653_s7] sm:$0xff]  }
  0x16   :  { %249 = vperm.xlu0 %485, %v243_v15  }
  0x18   :  { %254 = vperm.xlu1 %486, %v244_v16  }
  0x1a   :  { %344 = vperm.xlu0 %485, %v340_v17  }
  0x1c   :  { %349 = vperm.xlu1 %486, %v341_v18  }
  0x7d   :  { %v56_v20 = vpop.permute.xlu0 %55 }
  0x7f   :  { %v46_v21 = vpop.permute.xlu1 %45 }
  0x81   :  { %v61_v25 = vpop.permute.xlu0 %60 }
  0x83   :  { %v51_v29 = vpop.permute.xlu1 %50 }
  0x85   :  { %v160_v40 = vpop.permute.xlu0 %159 }
  0x87   :  { %v165_v41 = vpop.permute.xlu1 %164 }
  0x89   :  { %v150_v45 = vpop.permute.xlu0 %149 }
  0x8b   :  { %v155_v49 = vpop.permute.xlu1 %154 }
  0x8d   :  { %v260_v60 = vpop.permute.xlu0 %259 }
  0x8f   :  { %v265_v61 = vpop.permute.xlu1 %264 }
  0x91   :  { %v250_v2 = vpop.permute.xlu0 %249 }
  0x93   :  { %v255_v4 = vpop.permute.xlu1 %254 }
  0x95   :  { %v345_v15 = vpop.permute.xlu0 %344 }
  0x97   :  { %v350_v19 = vpop.permute.xlu1 %349 }
  0xc6   :  { %v452_v22 = vpop.f32.mrf.mxu0 }
  0xc7   :  { %v127_v24 = vadd.f32 %v452_v22, %v56_v20 }
  0xc8   :  { %v118_v23 = vpop.f32.mrf.mxu0 }
  0xc9   :  { %v119_v27 = vadd.f32 %v118_v23, %v46_v21  ;;  %v135_v31 = vmax.f32 %v127_v24, 0.0 }
  0xca   :  { %v453_v26 = vpop.f32.mrf.mxu0 }
  0xcb   :  { %v130_v28 = vadd.f32 %v453_v26, %v61_v25  ;;  %v133_v34 = vmax.f32 %v119_v27, 0.0 }
  0xcc   :  { %v121_v30 = vpop.f32.mrf.mxu0 }
  0xcd   :  { %v136_v32 = vmax.f32 %v130_v28, 0.0  ;;  %v122_v33 = vadd.f32 %v121_v30, %v51_v29 }
  0xcf   :  { %v134_v35 = vmax.f32 %v122_v33, 0.0  ;;  %v142_v36 = vpack.c.bf16 %v136_v32, %v135_v31 }
  0xd1   :  { %v141_v37 = vpack.c.bf16 %v134_v35, %v133_v34  ;;  %454 = vmatprep.subr.bf16.mxu1 %v142_v36 }
  0xd2   :  { %455 = vmatpush3.bf16.msra.mxu1 %v142_v36 }
  0xd3   :  { %456 = vmatprep.subr.bf16.mxu1 %v141_v37 }
  0xd6   :  { %457 = vmatpush3.bf16.msra.mxu1 %v141_v37 }
  0xd7   :  { %470 = vmatprep.subr.bf16.mxu1 %v517_v59 }
  0xd9   :  { %459 = vmatmul.mubr.msk.bf16.vlgmr.msra.gmra.mxu1 %vm177_vm2, %v490_v38 }
  0xda   :  { %474 = vmatprep.mubr.msk.bf16.mxu1 %vm518_vm3, %v517_v59 }
 0x199   :  { %v460_v42 = vpop.f32.mrf.mxu1 }
 0x19a   :  { %v227_v44 = vadd.f32 %v460_v42, %v160_v40 }
 0x19b   :  { %v218_v43 = vpop.f32.mrf.mxu1 }
 0x19c   :  { %v219_v47 = vadd.f32 %v218_v43, %v150_v45  ;;  %v235_v51 = vmax.f32 %v227_v44, 0.0 }
 0x19d   :  { %v461_v46 = vpop.f32.mrf.mxu1 }
 0x19e   :  { %v230_v48 = vadd.f32 %v461_v46, %v165_v41  ;;  %v233_v54 = vmax.f32 %v219_v47, 0.0 }
 0x19f   :  { %v221_v50 = vpop.f32.mrf.mxu1 }
 0x1a0   :  { %v236_v52 = vmax.f32 %v230_v48, 0.0  ;;  %v222_v53 = vadd.f32 %v221_v50, %v155_v49 }
 0x1a2   :  { %v242_v55 = vpack.c.bf16 %v236_v52, %v235_v51  ;;  %v234_v56 = vmax.f32 %v222_v53, 0.0 }
 0x1a4   :  { %v241_v57 = vpack.c.bf16 %v234_v56, %v233_v54  ;;  %462 = vmatprep.subr.bf16.mxu0 %v242_v55 }
 0x1a5   :  { %463 = vmatpush3.bf16.msra.mxu0 %v242_v55 }
 0x1a6   :  { %464 = vmatprep.subr.bf16.mxu0 %v241_v57 }
 0x1a9   :  { %465 = vmatpush3.bf16.msra.mxu0 %v241_v57 }
 0x1ac   :  { %467 = vmatmul.mubr.msk.bf16.vlgmr.msra.gmra.mxu0 %vm177_vm2, %v492_v58 }
 0x26c   :  { %v468_v62 = vpop.f32.mrf.mxu0 }
 0x26d   :  { %v326_v0 = vadd.f32 %v468_v62, %v260_v60 }
 0x26e   :  { %v317_v63 = vpop.f32.mrf.mxu0 }
 0x26f   :  { %v334_v6 = vmax.f32 %v326_v0, 0.0  ;;  %v318_v7 = vadd.f32 %v317_v63, %v250_v2 }
 0x270   :  { %v469_v1 = vpop.f32.mrf.mxu0 }
 0x271   :  { %v329_v3 = vadd.f32 %v469_v1, %v265_v61  ;;  %v332_v12 = vmax.f32 %v318_v7, 0.0 }
 0x272   :  { %v320_v5 = vpop.f32.mrf.mxu0 }
 0x273   :  { %v335_v8 = vmax.f32 %v329_v3, 0.0  ;;  %v321_v9 = vadd.f32 %v320_v5, %v255_v4 }
 0x275   :  { %v339_v10 = vpack.c.bf16 %v335_v8, %v334_v6  ;;  %v333_v11 = vmax.f32 %v321_v9, 0.0 }
 0x277   :  { %471 = vmatpush3.bf16.msra.mxu1 %v339_v10  ;;  %v338_v13 = vpack.c.bf16 %v333_v11, %v332_v12 }
 0x278   :  { %472 = vmatprep.subr.bf16.mxu1 %v517_v59 }
 0x27b   :  { %473 = vmatpush3.bf16.msra.mxu1 %v338_v13 }
 0x27e   :  { %475 = vmatmul.mubr.msk.bf16.vlgmr.msra.gmra.mxu1 %vm177_vm2, %v493_v14 }
 0x33e   :  { %v394_v16 = vpop.f32.mrf.mxu1 }
 0x33f   :  { %v395_v17 = vadd.f32 %v394_v16, %v345_v15 }
 0x340   :  { %v476_v18 = vpop.f32.mrf.mxu1 }
 0x341   :  { %402 = vst.msk [vmem:[#allocation2] sm:$0xff] %vm401_vm4, %v395_v17 }
 0x342   :  { %v397_v20 = vpop.f32.mrf.mxu1 }
 0x343   :  { %v398_v21 = vadd.f32 %v397_v20, %v350_v19 }
 0x344   :  { %v477_v22 = vpop.f32.mrf.mxu1 }
 0x345   :  { %403 = vst.msk [vmem:[#allocation2 + $0x8] sm:$0xff] %vm401_vm4, %v398_v21 }
 0x346   :  { %505 = shalt.err (!%p502_p4)
}
 0x347   :  { %s520_s7 = smov 128   ;;  %s521_s25 = smov 8  }
 0x348   :  { %415 = dma.vmem_to_hbm [thread:$0]  %s410_s23, 256, %s655_s9, [#allocation3], %s520_s7, %s520_s7, %s521_s25  }
 0x349   :  { %514 = dma.done.wait [#allocation3], 256  }
 0x34a   :  { %515 = vsyncadd [#allocation3], 4294967040 }
 0x34b   :  { %419 = vsyncpa [#allocation3], 1 }

</bundles_post_ra>
